<compile_context>
chip_gen: v7x
topology: tpu7x:2x2x1
jax: 0.10.0
libtpu: 0.0.40
codegen_flags: <defaults>
</compile_context>

<pallas_src>
import functools

import jax
import jax.numpy as jnp
from jax.experimental import pallas as pl
from jax.experimental.pallas import tpu as pltpu


def _round_up(x, m):
    return -(-x // m) * m


def _tpu_vmem_and_cores():
    """Returns (physical VMEM bytes per core, TensorCores per chip), with safe fallbacks."""
    vmem_bytes = 64 * 1024 * 1024          # conservative default (v7x-sized)
    n_cores = 1
    try:
        vmem_bytes = int(pltpu.get_tpu_info().vmem_capacity_bytes)
    except Exception:
        pass
    try:
        kind = jax.devices()[0].device_kind.lower()
        if "v7" in kind:                   # v7x: 2 TensorCores per chip
            n_cores = 2
    except Exception:
        pass
    return vmem_bytes, n_cores


def _focal_loss_kernel(logits_ref, target_ref, sum_ref, cnt_ref,
                       acc_sum, acc_cnt, m_run, s_run, p_run,
                       *, gamma, ignore_index):
    j = pl.program_id(1)               # row-block axis within this split
    c = pl.program_id(2)               # class-chunk axis (online LSE)
    nc = pl.num_programs(2)

    @pl.when((j == 0) & (c == 0))
    def _():
        acc_sum[...] = jnp.zeros_like(acc_sum)
        acc_cnt[...] = jnp.zeros_like(acc_cnt)

    @pl.when(c == 0)
    def _():
        m_run[...] = jnp.full_like(m_run, -jnp.inf)
        s_run[...] = jnp.zeros_like(s_run)
        p_run[...] = jnp.zeros_like(p_run)

    x = logits_ref[...].astype(jnp.float32)            # (tn, cb)
    t = target_ref[...]                                # (tn, 1) int32
    tn, cb = x.shape

    # ---- online (flash-style) logsumexp across class chunks ----
    m_prev = m_run[...]
    m_new = jnp.maximum(m_prev, jnp.max(x, axis=1, keepdims=True))   # (tn, 1)
    z = x - m_new                                                    # (tn, cb)
    s_new = s_run[...] * jnp.exp(m_prev - m_new) + jnp.sum(
        jnp.exp(z), axis=1, keepdims=True)                           # (tn, 1)

    # ---- gather the (unshifted) target-class logit in this chunk ----
    # where/select instead of one-hot multiply: no (tn, cb) int->f32 convert.
    class_ids = jax.lax.broadcasted_iota(jnp.int32, (tn, cb), 1) + c * cb
    p_new = p_run[...] + jnp.sum(
        jnp.where(class_ids == t, x, 0.0), axis=1, keepdims=True)    # (tn, 1)

    m_run[...] = m_new
    s_run[...] = s_new
    p_run[...] = p_new

    @pl.when(c == nc - 1)
    def _():
        # Focal modulation only on the gathered (tn, 1) value.
        lse = m_new + jnp.log(s_new)                    # (tn, 1) logsumexp
        log_pt_t = p_new - lse                          # log p_target
        pt_t = jnp.exp(log_pt_t)
        omp = 1.0 - pt_t

        gi = int(gamma)
        if float(gamma) == float(gi) and 0 <= gi <= 8:
            # Integer gamma: explicit multiply chain (VPU) instead of pow
            # (which lowers to exp+log on the EUP); avoids log(0) at pt == 1.
            if gi == 0:
                focal = jnp.ones_like(omp)
            else:
                focal = omp
                for _ in range(gi - 1):
                    focal = focal * omp
        else:
            focal = omp ** gamma                        # only (tn, 1) elements

        valid = (t != ignore_index).astype(jnp.float32)  # 0 for ignored/padded
        acc_sum[...] += -(focal * log_pt_t) * valid
        # NOTE: f32 count loses integer exactness past 2^24 valid rows/split.
        acc_cnt[...] += valid

    @pl.when((j == pl.num_programs(1) - 1) & (c == nc - 1))
    def _():
        # Single cross-sublane reduce, broadcast into a lane-dense (8,128) block.
        sum_ref[...] = jnp.zeros_like(sum_ref) + jnp.sum(acc_sum[...])
        cnt_ref[...] = jnp.zeros_like(cnt_ref) + jnp.sum(acc_cnt[...])


def focal_loss(logits, target, *, gamma=2.0, weight=None, reduction="mean",
               ignore_index=-100, tile_n=None, tile_c=None, n_splits=None):
    """Pallas implementation of FocalLoss.forward.

    logits: [N, C] float (f32 or bf16 — streamed at its native width),
    target: [N] int. Returns a scalar for reduction in {'mean', 'sum'}.
    """
    # TODO(synk): per-class `weight` tensor not implemented.
    assert weight is None
    if reduction not in ("mean", "sum"):
        # TODO(synk): reduction='none' would need a per-sample output BlockSpec.
        raise NotImplementedError("only 'mean' and 'sum' reductions implemented")

    N, C = logits.shape
    target = target.astype(jnp.int32)
    itemsize = logits.dtype.itemsize           # bf16 halves the HBM bytes/row

    # ---- generation-aware VMEM budgeting ----
    vmem_bytes, n_cores = _tpu_vmem_and_cores()
    if vmem_bytes >= 96 * 1024 * 1024:         # v5e / v6e: 128 MiB physical
        buf_budget = 40 * 1024 * 1024
        vmem_limit = 96 * 1024 * 1024
    else:                                      # v7x: 64 MiB physical per TC
        buf_budget = 12 * 1024 * 1024
        vmem_limit = 48 * 1024 * 1024

    if n_splits is None:
        # Row split across TensorCores only on multi-TC chips (v7x) and only
        # when there is enough work; on 1-TC v5e/v6e the split is pure overhead.
        n_splits = n_cores if N >= 16 * n_cores else 1

    # ---- tile sizing: real itemsize + lane-padded buffers + live f32 temps ----
    lane_pad = 128 * 4                         # a (tile_n, 1) buffer pads lanes to 128

    def row_bytes(cb):
        return (2 * cb * itemsize              # double-buffered logits tile
                + 3 * cb * 4                   # live f32 temporaries in the body
                + 2 * lane_pad                 # double-buffered lane-padded target
                + 5 * lane_pad)                # (tile_n, 1) scratch accumulators

    if tile_c is None:
        if 8 * row_bytes(C) <= buf_budget:
            tile_c = C                         # full-width rows fit comfortably
        else:
            # Vocab-scale C: lane-aligned chunks + online LSE in the kernel.
            tile_c = min(_round_up(C, 128), 2048)
            while tile_c > 128 and 8 * row_bytes(tile_c) > buf_budget:
                tile_c //= 2

    c_pad = C if tile_c == C else _round_up(C, tile_c)
    c_blocks = c_pad // tile_c

    if tile_n is None:
        tile_n = min(buf_budget // row_bytes(tile_c), 8192)
    rows_per_split_min = -(-N // n_splits)
    tile_n = min(tile_n, _round_up(rows_per_split_min, 8))
    tile_n = max(8, (tile_n // 8) * 8)

    rows_per_split = _round_up(rows_per_split_min, tile_n)
    n_pad = rows_per_split * n_splits
    blocks_per_split = rows_per_split // tile_n

    # Padded rows get target == ignore_index (contribute 0 to sum and count);
    # padded classes get a huge negative logit so they vanish from the LSE.
    if n_pad != N:
        logits = jnp.pad(logits, ((0, n_pad - N), (0, 0)))
        target = jnp.pad(target, (0, n_pad - N), constant_values=ignore_index)
    if c_pad != C:
        logits = jnp.pad(logits, ((0, 0), (0, c_pad - C)), constant_values=-1e30)
    target2d = target.reshape(n_pad, 1)

    kernel = functools.partial(_focal_loss_kernel, gamma=float(gamma),
                               ignore_index=int(ignore_index))

    def logits_map(i, j, c):
        return (i * blocks_per_split + j, c)

    def target_map(i, j, c):
        return (i * blocks_per_split + j, 0)

    def out_map(i, j, c):
        return (i, 0)

    if n_splits > 1:
        # Real 2-TC split on v7x; "parallel" alone does not change codegen.
        dim_sems = (getattr(pltpu, "CORE_PARALLEL", "parallel"),
                    getattr(pltpu, "ARBITRARY", "arbitrary"),
                    getattr(pltpu, "ARBITRARY", "arbitrary"))
    else:
        dim_sems = ("arbitrary", "arbitrary", "arbitrary")

    sum_out, cnt_out = pl.pallas_call(
        kernel,
        out_shape=(jax.ShapeDtypeStruct((n_splits * 8, 128), jnp.float32),
                   jax.ShapeDtypeStruct((n_splits * 8, 128), jnp.float32)),
        grid_spec=pltpu.PrefetchScalarGridSpec(
            num_scalar_prefetch=0,
            grid=(n_splits, blocks_per_split, c_blocks),
            in_specs=[
                pl.BlockSpec((tile_n, tile_c), logits_map),
                pl.BlockSpec((tile_n, 1), target_map),
            ],
            out_specs=[
                pl.BlockSpec((8, 128), out_map),
                pl.BlockSpec((8, 128), out_map),
            ],
            scratch_shapes=[
                pltpu.VMEM((tile_n, 1), jnp.float32),   # acc_sum
                pltpu.VMEM((tile_n, 1), jnp.float32),   # acc_cnt
                pltpu.VMEM((tile_n, 1), jnp.float32),   # m_run (online LSE max)
                pltpu.VMEM((tile_n, 1), jnp.float32),   # s_run (online LSE sum)
                pltpu.VMEM((tile_n, 1), jnp.float32),   # p_run (gathered logit)
            ],
        ),
        compiler_params=pltpu.CompilerParams(
            dimension_semantics=dim_sems,
            vmem_limit_bytes=vmem_limit,
        ),
    )(logits, target2d)

    # Each (8, 128) output block holds its split's partial broadcast everywhere.
    loss_sum = jnp.sum(sum_out[::8, 0])
    valid_cnt = jnp.sum(cnt_out[::8, 0])

    if reduction == "mean":
        # Matches PyTorch nll_loss: NaN when every target equals ignore_index.
        return loss_sum / valid_cnt
    return loss_sum


def _reference_focal_loss(logits, target, gamma=2.0, ignore_index=-100):
    log_pt = jax.nn.log_softmax(logits.astype(jnp.float32), axis=1)
    pt = jnp.exp(log_pt)
    mod = (1.0 - pt) ** gamma * log_pt
    valid = (target != ignore_index)
    safe_t = jnp.where(valid, target, 0)
    picked = jnp.take_along_axis(mod, safe_t[:, None], axis=1)[:, 0]
    loss = -picked * valid.astype(jnp.float32)
    return jnp.sum(loss) / jnp.sum(valid.astype(jnp.float32))


if __name__ == "__main__":
    key = jax.random.PRNGKey(0)

    # Test 1: small full-width-C path ([N, C] as in the module's forward).
    N, C = 16, 32
    k1, k2 = jax.random.split(key)
    logits = jax.random.normal(k1, (N, C), dtype=jnp.float32)
    target = jax.random.randint(k2, (N,), 0, C, dtype=jnp.int32)
    target = target.at[3].set(-100)          # exercise ignore_index

    out = focal_loss(logits, target, gamma=2.0, reduction="mean",
                     ignore_index=-100)
    out = jax.block_until_ready(out)
    ref = _reference_focal_loss(logits, target)
    assert jnp.allclose(out, ref, atol=1e-5, rtol=1e-5), (out, ref)

    # Test 2: force the C-chunked online-LSE path (vocab-scale-C code path).
    N2, C2 = 24, 300
    k3, k4 = jax.random.split(k2)
    logits2 = jax.random.normal(k3, (N2, C2), dtype=jnp.float32)
    target2 = jax.random.randint(k4, (N2,), 0, C2, dtype=jnp.int32)
    target2 = target2.at[0].set(-100)
    out2 = focal_loss(logits2, target2, gamma=2.0, reduction="mean",
                      ignore_index=-100, tile_c=128, tile_n=8)
    out2 = jax.block_until_ready(out2)
    ref2 = _reference_focal_loss(logits2, target2)
    assert jnp.allclose(out2, ref2, atol=1e-5, rtol=1e-5), (out2, ref2)

    print("KERNEL_OK")
</pallas_src>

<mosaic_0001>
module attributes {stable_mosaic.version = 11 : i64} {
  func.func @_focal_loss_kernel(%arg0: i32, %arg1: i32, %arg2: i32, %arg3: memref<16x32xf32, #tpu.memory_space<vmem>>, %arg4: memref<16x1xi32, #tpu.memory_space<vmem>>, %arg5: memref<8x128xf32, #tpu.memory_space<vmem>>, %arg6: memref<8x128xf32, #tpu.memory_space<vmem>>, %arg7: memref<16x1xf32, #tpu.memory_space<vmem>>, %arg8: memref<16x1xf32, #tpu.memory_space<vmem>>, %arg9: memref<16x1xf32, #tpu.memory_space<vmem>>, %arg10: memref<16x1xf32, #tpu.memory_space<vmem>>, %arg11: memref<16x1xf32, #tpu.memory_space<vmem>>) attributes {dimension_semantics = [#tpu.dimension_semantics<arbitrary>, #tpu.dimension_semantics<arbitrary>, #tpu.dimension_semantics<arbitrary>], iteration_bounds = array<i64: 1, 1, 1>, scalar_prefetch = 0 : i64, scratch_operands = 5 : i64, tpu.core_type = #tpu.core_type<tc>, window_params = [{transform_indices = @transform_0, window_bounds = array<i64: 16, 32>}, {transform_indices = @transform_1, window_bounds = array<i64: 16, 1>}, {transform_indices = @transform_2, window_bounds = array<i64: 8, 128>}, {transform_indices = @transform_3, window_bounds = array<i64: 8, 128>}]} {
    %c0_i32 = arith.constant 0 : i32
    %0 = arith.cmpi eq, %arg1, %c0_i32 : i32
    %c0_i32_0 = arith.constant 0 : i32
    %1 = arith.cmpi eq, %arg2, %c0_i32_0 : i32
    %2 = arith.andi %0, %1 : i1
    %3 = arith.extui %2 : i1 to i32
    %c0_i32_1 = arith.constant 0 : i32
    %4 = arith.cmpi ne, %3, %c0_i32_1 : i32
    scf.if %4 {
      %cst_27 = arith.constant 0.000000e+00 : f32
      %47 = vector.broadcast %cst_27 : f32 to vector<16x1xf32>
      %c0_28 = arith.constant 0 : index
      %c0_29 = arith.constant 0 : index
      %48 = vector.load %arg7[%c0_28, %c0_29] : memref<16x1xf32, #tpu.memory_space<vmem>>, vector<16x1xf32>
      tpu.vector_store %arg7[%c0_28, %c0_29], %47 {strides = array<i32>} : memref<16x1xf32, #tpu.memory_space<vmem>>, vector<16x1xf32>,
      %cst_30 = arith.constant 0.000000e+00 : f32
      %49 = vector.broadcast %cst_30 : f32 to vector<16x1xf32>
      %c0_31 = arith.constant 0 : index
      %c0_32 = arith.constant 0 : index
      %50 = vector.load %arg8[%c0_31, %c0_32] : memref<16x1xf32, #tpu.memory_space<vmem>>, vector<16x1xf32>
      tpu.vector_store %arg8[%c0_31, %c0_32], %49 {strides = array<i32>} : memref<16x1xf32, #tpu.memory_space<vmem>>, vector<16x1xf32>,
    } else {
    }
    %c0_i32_2 = arith.constant 0 : i32
    %5 = arith.cmpi eq, %arg2, %c0_i32_2 : i32
    %6 = arith.extui %5 : i1 to i32
    %c0_i32_3 = arith.constant 0 : i32
    %7 = arith.cmpi ne, %6, %c0_i32_3 : i32
    scf.if %7 {
      %cst_27 = arith.constant 0xFF800000 : f32
      %47 = vector.broadcast %cst_27 : f32 to vector<16x1xf32>
      %c0_28 = arith.constant 0 : index
      %c0_29 = arith.constant 0 : index
      %48 = vector.load %arg9[%c0_28, %c0_29] : memref<16x1xf32, #tpu.memory_space<vmem>>, vector<16x1xf32>
      tpu.vector_store %arg9[%c0_28, %c0_29], %47 {strides = array<i32>} : memref<16x1xf32, #tpu.memory_space<vmem>>, vector<16x1xf32>,
      %cst_30 = arith.constant 0.000000e+00 : f32
      %49 = vector.broadcast %cst_30 : f32 to vector<16x1xf32>
      %c0_31 = arith.constant 0 : index
      %c0_32 = arith.constant 0 : index
      %50 = vector.load %arg10[%c0_31, %c0_32] : memref<16x1xf32, #tpu.memory_space<vmem>>, vector<16x1xf32>
      tpu.vector_store %arg10[%c0_31, %c0_32], %49 {strides = array<i32>} : memref<16x1xf32, #tpu.memory_space<vmem>>, vector<16x1xf32>,
      %cst_33 = arith.constant 0.000000e+00 : f32
      %51 = vector.broadcast %cst_33 : f32 to vector<16x1xf32>
      %c0_34 = arith.constant 0 : index
      %c0_35 = arith.constant 0 : index
      %52 = vector.load %arg11[%c0_34, %c0_35] : memref<16x1xf32, #tpu.memory_space<vmem>>, vector<16x1xf32>
      tpu.vector_store %arg11[%c0_34, %c0_35], %51 {strides = array<i32>} : memref<16x1xf32, #tpu.memory_space<vmem>>, vector<16x1xf32>,
    } else {
    }
    %c0 = arith.constant 0 : index
    %c0_4 = arith.constant 0 : index
    %8 = vector.load %arg3[%c0, %c0_4] : memref<16x32xf32, #tpu.memory_space<vmem>>, vector<16x32xf32>
    %c0_5 = arith.constant 0 : index
    %c0_6 = arith.constant 0 : index
    %9 = vector.load %arg4[%c0_5, %c0_6] : memref<16x1xi32, #tpu.memory_space<vmem>>, vector<16x1xi32>
    %c0_7 = arith.constant 0 : index
    %c0_8 = arith.constant 0 : index
    %10 = vector.load %arg9[%c0_7, %c0_8] : memref<16x1xf32, #tpu.memory_space<vmem>>, vector<16x1xf32>
    %cst = arith.constant dense<0xFF800000> : vector<16xf32>
    %11 = vector.multi_reduction <maximumf>, %8, %cst [1] : vector<16x32xf32> to vector<16xf32>
    %12 = vector.shape_cast %11 : vector<16xf32> to vector<16x1xf32>
    %13 = arith.maximumf %10, %12 : vector<16x1xf32>
    %14 = vector.broadcast %13 : vector<16x1xf32> to vector<16x32xf32>
    %15 = arith.subf %8, %14 : vector<16x32xf32>
    %c0_9 = arith.constant 0 : index
    %c0_10 = arith.constant 0 : index
    %16 = vector.load %arg10[%c0_9, %c0_10] : memref<16x1xf32, #tpu.memory_space<vmem>>, vector<16x1xf32>
    %17 = arith.subf %10, %13 : vector<16x1xf32>
    %18 = math.exp %17 : vector<16x1xf32>
    %19 = arith.mulf %16, %18 : vector<16x1xf32>
    %20 = math.exp %15 : vector<16x32xf32>
    %cst_11 = arith.constant dense<0.000000e+00> : vector<16xf32>
    %21 = vector.multi_reduction <add>, %20, %cst_11 [1] : vector<16x32xf32> to vector<16xf32>
    %22 = vector.shape_cast %21 : vector<16xf32> to vector<16x1xf32>
    %23 = arith.addf %19, %22 : vector<16x1xf32>
    %24 = tpu.iota {dimensions = array<i32: 1>} : vector<16x32xi32>
    %c32_i32 = arith.constant 32 : i32
    %25 = arith.muli %arg2, %c32_i32 : i32
    %26 = vector.broadcast %25 : i32 to vector<16x32xi32>
    %27 = arith.addi %24, %26 : vector<16x32xi32>
    %c0_12 = arith.constant 0 : index
    %c0_13 = arith.constant 0 : index
    %28 = vector.load %arg11[%c0_12, %c0_13] : memref<16x1xf32, #tpu.memory_space<vmem>>, vector<16x1xf32>
    %29 = vector.broadcast %9 : vector<16x1xi32> to vector<16x32xi32>
    %30 = arith.cmpi eq, %27, %29 : vector<16x32xi32>
    %cst_14 = arith.constant 0.000000e+00 : f32
    %31 = vector.broadcast %cst_14 : f32 to vector<16x32xf32>
    %32 = arith.select %30, %8, %31 : vector<16x32xi1>, vector<16x32xf32>
    %cst_15 = arith.constant dense<0.000000e+00> : vector<16xf32>
    %33 = vector.multi_reduction <add>, %32, %cst_15 [1] : vector<16x32xf32> to vector<16xf32>
    %34 = vector.shape_cast %33 : vector<16xf32> to vector<16x1xf32>
    %35 = arith.addf %28, %34 : vector<16x1xf32>
    %c0_16 = arith.constant 0 : index
    %c0_17 = arith.constant 0 : index
    %36 = vector.load %arg9[%c0_16, %c0_17] : memref<16x1xf32, #tpu.memory_space<vmem>>, vector<16x1xf32>
    tpu.vector_store %arg9[%c0_16, %c0_17], %13 {strides = array<i32>} : memref<16x1xf32, #tpu.memory_space<vmem>>, vector<16x1xf32>,
    %c0_18 = arith.constant 0 : index
    %c0_19 = arith.constant 0 : index
    %37 = vector.load %arg10[%c0_18, %c0_19] : memref<16x1xf32, #tpu.memory_space<vmem>>, vector<16x1xf32>
    tpu.vector_store %arg10[%c0_18, %c0_19], %23 {strides = array<i32>} : memref<16x1xf32, #tpu.memory_space<vmem>>, vector<16x1xf32>,
    %c0_20 = arith.constant 0 : index
    %c0_21 = arith.constant 0 : index
    %38 = vector.load %arg11[%c0_20, %c0_21] : memref<16x1xf32, #tpu.memory_space<vmem>>, vector<16x1xf32>
    tpu.vector_store %arg11[%c0_20, %c0_21], %35 {strides = array<i32>} : memref<16x1xf32, #tpu.memory_space<vmem>>, vector<16x1xf32>,
    %c0_i32_22 = arith.constant 0 : i32
    %39 = arith.cmpi eq, %arg2, %c0_i32_22 : i32
    %40 = arith.extui %39 : i1 to i32
    %c0_i32_23 = arith.constant 0 : i32
    %41 = arith.cmpi ne, %40, %c0_i32_23 : i32
    scf.if %41 {
      %47 = math.log %23 : vector<16x1xf32>
      %48 = arith.addf %13, %47 : vector<16x1xf32>
      %49 = arith.subf %35, %48 : vector<16x1xf32>
      %50 = math.exp %49 : vector<16x1xf32>
      %cst_27 = arith.constant 1.000000e+00 : f32
      %51 = vector.broadcast %cst_27 : f32 to vector<16x1xf32>
      %52 = arith.subf %51, %50 : vector<16x1xf32>
      %53 = arith.mulf %52, %52 : vector<16x1xf32>
      %c-100_i32 = arith.constant -100 : i32
      %54 = vector.broadcast %c-100_i32 : i32 to vector<16x1xi32>
      %55 = arith.cmpi ne, %9, %54 : vector<16x1xi32>
      %56 = arith.extui %55 : vector<16x1xi1> to vector<16x1xi32>
      %57 = arith.sitofp %56 : vector<16x1xi32> to vector<16x1xf32>
      %c0_28 = arith.constant 0 : index
      %c0_29 = arith.constant 0 : index
      %58 = vector.load %arg7[%c0_28, %c0_29] : memref<16x1xf32, #tpu.memory_space<vmem>>, vector<16x1xf32>
      %59 = arith.mulf %53, %49 : vector<16x1xf32>
      %cst_30 = arith.constant 0.000000e+00 : f32
      %60 = vector.broadcast %cst_30 : f32 to vector<16x1xf32>
      %61 = arith.subf %60, %59 : vector<16x1xf32>
      %62 = arith.mulf %61, %57 : vector<16x1xf32>
      %63 = arith.addf %58, %62 : vector<16x1xf32>
      %c0_31 = arith.constant 0 : index
      %c0_32 = arith.constant 0 : index
      %64 = vector.load %arg7[%c0_31, %c0_32] : memref<16x1xf32, #tpu.memory_space<vmem>>, vector<16x1xf32>
      tpu.vector_store %arg7[%c0_31, %c0_32], %63 {strides = array<i32>} : memref<16x1xf32, #tpu.memory_space<vmem>>, vector<16x1xf32>,
      %c0_33 = arith.constant 0 : index
      %c0_34 = arith.constant 0 : index
      %65 = vector.load %arg8[%c0_33, %c0_34] : memref<16x1xf32, #tpu.memory_space<vmem>>, vector<16x1xf32>
      %66 = arith.addf %65, %57 : vector<16x1xf32>
      %c0_35 = arith.constant 0 : index
      %c0_36 = arith.constant 0 : index
      %67 = vector.load %arg8[%c0_35, %c0_36] : memref<16x1xf32, #tpu.memory_space<vmem>>, vector<16x1xf32>
      tpu.vector_store %arg8[%c0_35, %c0_36], %66 {strides = array<i32>} : memref<16x1xf32, #tpu.memory_space<vmem>>, vector<16x1xf32>,
    } else {
    }
    %c0_i32_24 = arith.constant 0 : i32
    %42 = arith.cmpi eq, %arg1, %c0_i32_24 : i32
    %c0_i32_25 = arith.constant 0 : i32
    %43 = arith.cmpi eq, %arg2, %c0_i32_25 : i32
    %44 = arith.andi %42, %43 : i1
    %45 = arith.extui %44 : i1 to i32
    %c0_i32_26 = arith.constant 0 : i32
    %46 = arith.cmpi ne, %45, %c0_i32_26 : i32
    scf.if %46 {
      %cst_27 = arith.constant 0.000000e+00 : f32
      %47 = vector.broadcast %cst_27 : f32 to vector<8x128xf32>
      %c0_28 = arith.constant 0 : index
      %c0_29 = arith.constant 0 : index
      %48 = vector.load %arg7[%c0_28, %c0_29] : memref<16x1xf32, #tpu.memory_space<vmem>>, vector<16x1xf32>
      %49 = vector.shape_cast %48 : vector<16x1xf32> to vector<1x16x1xf32>
      %cst_30 = arith.constant dense<0.000000e+00> : vector<1xf32>
      %50 = vector.multi_reduction <add>, %49, %cst_30 [1, 2] : vector<1x16x1xf32> to vector<1xf32>
      %51 = vector.shape_cast %50 : vector<1xf32> to vector<1x1x1xf32>
      %52 = vector.extract %51[0, 0, 0] : f32 from vector<1x1x1xf32>
      %53 = vector.broadcast %52 : f32 to vector<8x128xf32>
      %54 = arith.addf %47, %53 : vector<8x128xf32>
      %c0_31 = arith.constant 0 : index
      %c0_32 = arith.constant 0 : index
      %55 = vector.load %arg5[%c0_31, %c0_32] : memref<8x128xf32, #tpu.memory_space<vmem>>, vector<8x128xf32>
      tpu.vector_store %arg5[%c0_31, %c0_32], %54 {strides = array<i32>} : memref<8x128xf32, #tpu.memory_space<vmem>>, vector<8x128xf32>,
      %cst_33 = arith.constant 0.000000e+00 : f32
      %56 = vector.broadcast %cst_33 : f32 to vector<8x128xf32>
      %c0_34 = arith.constant 0 : index
      %c0_35 = arith.constant 0 : index
      %57 = vector.load %arg8[%c0_34, %c0_35] : memref<16x1xf32, #tpu.memory_space<vmem>>, vector<16x1xf32>
      %58 = vector.shape_cast %57 : vector<16x1xf32> to vector<1x16x1xf32>
      %cst_36 = arith.constant dense<0.000000e+00> : vector<1xf32>
      %59 = vector.multi_reduction <add>, %58, %cst_36 [1, 2] : vector<1x16x1xf32> to vector<1xf32>
      %60 = vector.shape_cast %59 : vector<1xf32> to vector<1x1x1xf32>
      %61 = vector.extract %60[0, 0, 0] : f32 from vector<1x1x1xf32>
      %62 = vector.broadcast %61 : f32 to vector<8x128xf32>
      %63 = arith.addf %56, %62 : vector<8x128xf32>
      %c0_37 = arith.constant 0 : index
      %c0_38 = arith.constant 0 : index
      %64 = vector.load %arg6[%c0_37, %c0_38] : memref<8x128xf32, #tpu.memory_space<vmem>>, vector<8x128xf32>
      tpu.vector_store %arg6[%c0_37, %c0_38], %63 {strides = array<i32>} : memref<8x128xf32, #tpu.memory_space<vmem>>, vector<8x128xf32>,
    } else {
    }
    return
  }
  func.func @transform_0(%arg0: i32, %arg1: i32, %arg2: i32) -> (i32, i32) {
    %c1_i32 = arith.constant 1 : i32
    %0 = arith.muli %arg0, %c1_i32 : i32
    %1 = arith.addi %0, %arg1 : i32
    %c0_i32 = arith.constant 0 : i32
    return %1, %arg2 : i32, i32
  }
  func.func @transform_1(%arg0: i32, %arg1: i32, %arg2: i32) -> (i32, i32) {
    %c1_i32 = arith.constant 1 : i32
    %0 = arith.muli %arg0, %c1_i32 : i32
    %1 = arith.addi %0, %arg1 : i32
    %c0_i32 = arith.constant 0 : i32
    %c0_i32_0 = arith.constant 0 : i32
    return %1, %c0_i32 : i32, i32
  }
  func.func @transform_2(%arg0: i32, %arg1: i32, %arg2: i32) -> (i32, i32) {
    %c0_i32 = arith.constant 0 : i32
    %c0_i32_0 = arith.constant 0 : i32
    return %arg0, %c0_i32 : i32, i32
  }
  func.func @transform_3(%arg0: i32, %arg1: i32, %arg2: i32) -> (i32, i32) {
    %c0_i32 = arith.constant 0 : i32
    %c0_i32_0 = arith.constant 0 : i32
    return %arg0, %c0_i32 : i32, i32
  }
}

</mosaic_0001>

<bundles_post_ra>
// kernel: tpu_custom_call.1
= control target key start
LH: loop header
LB: loop body
LE: loop exit
PB: predicated region body
PF: predicated region fallthrough
CT: control target
= control target key end

     0   :  { %9 = vsyncpa [#allocation8], 0  ;;  %vm86_vm0 = vcmask 261120   ;;  %s473_s0 = inlined_call_operand.vmem [shape: f32[16,32], index: 0, kind: input, shape index: {}]   ;;  %s474_s1 = inlined_call_operand.vmem [shape: s32[16,1], index: 1, kind: input, shape index: {}]   ;;  %s475_s2 = inlined_call_operand.hbm [shape: f32[8,128], index: 2, kind: output, shape index: {0}]   ;;  %s476_s3 = inlined_call_operand.hbm [shape: f32[8,128], index: 3, kind: output, shape index: {1}]  }
   0x1   :  { %v80_v0 = vld [vmem:[%s473_s0] sm:$0xff]  ;;  %v388_v1 = vld [vmem:[%s473_s0 + $0x8] sm:$0xff] }
   0x2   :  { %10 = vsyncpa [#allocation10], 0  ;;  %v87_v2 = vsel %vm86_vm0, %v80_v0, -inf  ;;  %v90_v3 = vsel %vm86_vm0, %v388_v1, -inf  ;;  %vm65_vm1 = vcmask 7168   ;;  %v357_v4 = vmov -inf  }
   0x3   :  { %88 = vmax.xlane.f32.xlu0 %v87_v2  ;;  %74 = vst.msk [vmem:[#allocation4] sm:$0xff] %vm65_vm1, %v357_v4  ;;  %75 = vst.msk [vmem:[#allocation4 + $0x8] sm:$0xff] %vm65_vm1, %v357_v4  ;;  %v358_v5 = vmov 0   ;;  %v359_v6 = vmov 0.0   ;;  %v82_v7 = vld [vmem:[%s474_s1] sm:$0xff]  ;;  %v83_v8 = vld [vmem:[%s474_s1 + $0x8] sm:$0xff]  ;;  %v129_v21 = vlaneseq }
   0x4   :  { %291 = vset.pattern.permute.xlu1 %v358_v5  ;;  %292 = vset.pattern.permute.xlu0 %v358_v5  ;;  %69 = vst.msk [vmem:[#allocation3 + $0x8] sm:$0xff] %vm65_vm1, %v359_v6  ;;  %66 = vst.msk [vmem:[#allocation2] sm:$0xff] %vm65_vm1, %v359_v6  ;;  %vm181_vm2 = vcmp.ne.s32.totalorder %v83_v8, 4294967196  ;;  %vm180_vm3 = vcmp.ne.s32.totalorder %v82_v7, 4294967196  ;;  %s360_s1 = smov [#allocation7]   ;;  %s361_s21 = smov [#allocation9]  }
   0x5   :  { %67 = vst.msk [vmem:[#allocation2 + $0x8] sm:$0xff] %vm65_vm1, %v359_v6  ;;  %68 = vst.msk [vmem:[#allocation3] sm:$0xff] %vm65_vm1, %v359_v6  ;;  %v409_v9 = vsel %vm181_vm2, 1.0, %v359_v6  ;;  %v411_v11 = vsel %vm180_vm3, 1.0, %v359_v6  ;;  %v130_v22 = vand.u32 127, %v129_v21  ;;  %s246_s19 = sshll.u32 %s360_s1, 4  ;;  %s247_s19 = int_to_ptr.vmem [resolvable:$true] %s246_s19 }
   0x6   :  { %76 = vst.msk [vmem:[#allocation5] sm:$0xff] %vm65_vm1, %v359_v6  ;;  %77 = vst.msk [vmem:[#allocation5 + $0x8] sm:$0xff] %vm65_vm1, %v359_v6  ;;  %s256_s22 = sshll.u32 %s361_s21, 4  ;;  %s309_s23 = scalar_lea.vmem %s247_s19, 128  ;;  %s257_s22 = int_to_ptr.vmem [resolvable:$true] %s256_s22 }
   0x7   :  { %91 = vmax.xlane.f32.xlu0 %v90_v3  ;;  %78 = vst.msk [vmem:[#allocation6] sm:$0xff] %vm65_vm1, %v359_v6  ;;  %79 = vst.msk [vmem:[#allocation6 + $0x8] sm:$0xff] %vm65_vm1, %v359_v6  ;;  %p310_p0 = scmp.ne.s32.totalorder %s247_s19, %s309_s23  ;;  %p314_p1 = scmp.lt.s32.totalorder %s247_s19, %s247_s19 }
   0x8   :  { %p315_p2 = scmp.lt.s32.totalorder %s309_s23, %s309_s23 }
   0xa   :  { %v84_v15 = vld [vmem:[#allocation4] sm:$0xff]  ;;  %v85_v18 = vld [vmem:[#allocation4 + $0x8] sm:$0xff]  ;;  %p316_p3 = por %p315_p2, %p314_p1 }
   0xb   :  { %v199_v10 = vld [vmem:[#allocation3 + $0x8] sm:$0xff] }
   0xc   :  { %v198_v12 = vld [vmem:[#allocation3] sm:$0xff]  ;;  %v201_v13 = vadd.f32 %v409_v9, %v199_v10  ;;  %p317_p4 = pnand %p316_p3, %p310_p0 }
   0xd   :  { %v200_v14 = vadd.f32 %v411_v11, %v198_v12  ;;  %v107_v47 = vld [vmem:[#allocation5] sm:$0xff]  ;;  %v108_v51 = vld [vmem:[#allocation5 + $0x8] sm:$0xff] }
   0xe   :  { %203 = vst.msk [vmem:[#allocation3 + $0x8] sm:$0xff] %vm65_vm1, %v201_v13  ;;  %v134_v40 = vld [vmem:[#allocation6] sm:$0xff]  ;;  %v135_v56 = vld [vmem:[#allocation6 + $0x8] sm:$0xff] }
   0xf   :  { %202 = vst.msk [vmem:[#allocation3] sm:$0xff] %vm65_vm1, %v200_v14 }
  0x1d   :  { %137 = vperm.xlu0 %292, %v82_v7  }
  0x90   :  { %v89_v16 = vpop.xlane.xlu0 %88 }
  0x91   :  { %v417_v17 = vmax.f32 %v84_v15, %v89_v16 }
  0x93   :  { %155 = vst.msk [vmem:[#allocation4] sm:$0xff] %vm65_vm1, %v417_v17  ;;  %97 = vperm.xlu1 %291, %v417_v17   ;;  %v109_v42 = vsub.f32 %v84_v15, %v417_v17  ;;  %v186_v15 = vld [vmem:[#allocation2] sm:$0xff] }
  0x94   :  { %v92_v19 = vpop.xlane.xlu0 %91 }
  0x95   :  { %v422_v20 = vmax.f32 %v85_v18, %v92_v19  ;;  %v111_v43 = vmul.f32 1.442695, %v109_v42 }
  0x97   :  { %156 = vst.msk [vmem:[#allocation4 + $0x8] sm:$0xff] %vm65_vm1, %v422_v20  ;;  %102 = vperm.xlu1 %291, %v422_v20   ;;  %v110_v44 = vsub.f32 %v85_v18, %v422_v20 }
  0x99   :  { %v113_v45 = vmul.f32 1.442695, %v110_v44 }
  0x9b   :  { %140 = vperm.xlu1 %291, %v83_v8  }
  0x9c   :  { %v138_v23 = vpop.permute.xlu0 %137 }
  0x9d   :  { %vm142_vm4 = vcmp.eq.s32.totalorder %v130_v22, %v138_v23 }
  0x9e   :  { %v144_v24 = vsel %vm142_vm4, %v80_v0, 0.0 }
  0x9f   :  { %v146_v25 = vsel %vm86_vm0, %v144_v24, 0.0  ;;  %v223_v24 = vld [vmem:[#allocation3] sm:$0xff] }
  0xa0   :  { %147 = vadd.xlane.f32.xlu0 %v146_v25  ;;  %v224_v25 = vld [vmem:[#allocation3 + $0x8] sm:$0xff] }
 0x112   :  { %v98_v26 = vpop.permute.xlu1 %97 }
 0x113   :  { %v105_v27 = vsub.f32 %v80_v0, %v98_v26 }
 0x115   :  { %v117_v28 = vmul.f32 1.442695, %v105_v27 }
 0x116   :  { %v103_v29 = vpop.permute.xlu1 %102 }
 0x117   :  { %293 = vpow2.f32 %v117_v28  ;;  %v106_v30 = vsub.f32 %v388_v1, %v103_v29  ;;  %v226_v29 = vsel %vm65_vm1, %v224_v25, 0.0 }
 0x119   :  { %v119_v31 = vmul.f32 1.442695, %v106_v30 }
 0x11a   :  { %v141_v33 = vpop.permute.xlu1 %140 }
 0x11b   :  { %295 = vpow2.f32 %v119_v31  ;;  %vm143_vm5 = vcmp.eq.s32.totalorder %v130_v22, %v141_v33 }
 0x11c   :  { %v145_v37 = vsel %vm143_vm5, %v388_v1, 0.0  ;;  %297 = vpow2.f32 %v111_v43 }
 0x11d   :  { %v149_v38 = vsel %vm86_vm0, %v145_v37, 0.0  ;;  %299 = vpow2.f32 %v113_v45 }
 0x121   :  { %v294_v32 = vpop.eup %293 }
 0x122   :  { %v121_v34 = vsel %vm86_vm0, %v294_v32, 0.0 }
 0x123   :  { %122 = vadd.xlane.f32.xlu1 %v121_v34 }
 0x125   :  { %v296_v35 = vpop.eup %295 }
 0x126   :  { %v124_v36 = vsel %vm86_vm0, %v296_v35, 0.0  ;;  %v298_v46 = vpop.eup %297 }
 0x127   :  { %125 = vadd.xlane.f32.xlu1 %v124_v36  ;;  %v115_v48 = vmul.f32 %v298_v46, %v107_v47  ;;  %v300_v49 = vpop.eup %299 }
 0x128   :  { %v116_v53 = vmul.f32 %v300_v49, %v108_v51 }
 0x12b   :  { %150 = vadd.xlane.f32.xlu1 %v149_v38 }
 0x12d   :  { %v148_v39 = vpop.xlane.xlu0 %147 }
 0x12e   :  { %v152_v41 = vadd.f32 %v148_v39, %v134_v40 }
 0x130   :  { %159 = vst.msk [vmem:[#allocation6] sm:$0xff] %vm65_vm1, %v152_v41 }
 0x1b0   :  { %v123_v50 = vpop.xlane.xlu1 %122 }
 0x1b1   :  { %v127_v52 = vadd.f32 %v123_v50, %v115_v48 }
 0x1b3   :  { %157 = vst.msk [vmem:[#allocation5] sm:$0xff] %vm65_vm1, %v127_v52  ;;  %301 = vlog2.f32 %v127_v52 }
 0x1b4   :  { %v126_v54 = vpop.xlane.xlu1 %125 }
 0x1b5   :  { %v128_v55 = vadd.f32 %v126_v54, %v116_v53 }
 0x1b7   :  { %158 = vst.msk [vmem:[#allocation5 + $0x8] sm:$0xff] %vm65_vm1, %v128_v55  ;;  %303 = vlog2.f32 %v128_v55 }
 0x1b8   :  { %v151_v57 = vpop.xlane.xlu1 %150 }
 0x1b9   :  { %v153_v58 = vadd.f32 %v151_v57, %v135_v56 }
 0x1bb   :  { %160 = vst.msk [vmem:[#allocation6 + $0x8] sm:$0xff] %vm65_vm1, %v153_v58 }
 0x1bd   :  { %v302_v59 = vpop.eup %301 }
 0x1be   :  { %v165_v60 = vmul.f32 0.6931472, %v302_v59 }
 0x1c0   :  { %v168_v61 = vadd.f32 %v165_v60, %v417_v17 }
 0x1c1   :  { %v304_v62 = vpop.eup %303 }
 0x1c2   :  { %v167_v63 = vmul.f32 0.6931472, %v304_v62  ;;  %v170_v0 = vsub.f32 %v152_v41, %v168_v61 }
 0x1c4   :  { %v169_v1 = vadd.f32 %v167_v63, %v422_v20  ;;  %v172_v2 = vmul.f32 1.442695, %v170_v0  ;;  %v187_v20 = vld [vmem:[#allocation2 + $0x8] sm:$0xff] }
 0x1c6   :  { %v171_v3 = vsub.f32 %v153_v58, %v169_v1  ;;  %305 = vpow2.f32 %v172_v2 }
 0x1c8   :  { %v174_v4 = vmul.f32 1.442695, %v171_v3 }
 0x1ca   :  { %307 = vpow2.f32 %v174_v4 }
 0x1d0   :  { %v306_v5 = vpop.eup %305 }
 0x1d1   :  { %v176_v6 = vsub.f32 1.0, %v306_v5 }
 0x1d3   :  { %v178_v7 = vmul.f32 %v176_v6, %v176_v6 }
 0x1d4   :  { %v308_v8 = vpop.eup %307 }
 0x1d5   :  { %v177_v10 = vsub.f32 1.0, %v308_v8  ;;  %v188_v12 = vmul.f32 %v178_v7, %v170_v0 }
 0x1d7   :  { %v179_v13 = vmul.f32 %v177_v10, %v177_v10  ;;  %v190_v14 = vsub.f32 0.0, %v188_v12 }
 0x1d9   :  { %v189_v16 = vmul.f32 %v179_v13, %v171_v3  ;;  %v192_v17 = vmul.f32 %v411_v11, %v190_v14  ;;  %v225_v11 = vsel %vm65_vm1, %v223_v24, 0.0 }
 0x1db   :  { %v191_v18 = vsub.f32 0.0, %v189_v16  ;;  %v194_v19 = vadd.f32 %v192_v17, %v186_v15 }
 0x1dd   :  { %v193_v21 = vmul.f32 %v409_v9, %v191_v18  ;;  %196 = vst.msk [vmem:[#allocation2] sm:$0xff] %vm65_vm1, %v194_v19  ;;  %v227_v9 = vadd.f32 %v226_v29, %v225_v11 }
 0x1df   :  { %v195_v22 = vadd.f32 %v193_v21, %v187_v20 }
 0x1e1   :  { %197 = vst.msk [vmem:[#allocation2 + $0x8] sm:$0xff] %vm65_vm1, %v195_v22 }
 0x1e4   :  { %v206_v23 = vld [vmem:[#allocation2] sm:$0xff] }
 0x1e5   :  { %v208_v27 = vsel %vm65_vm1, %v206_v23, 0.0 }
 0x1e8   :  { %v207_v26 = vld [vmem:[#allocation2 + $0x8] sm:$0xff] }
 0x1e9   :  { %v209_v28 = vsel %vm65_vm1, %v207_v26, 0.0 }
 0x1ea   :  { %v210_v30 = vadd.f32 %v209_v28, %v208_v27 }
 0x1ec   :  { %211 = vadd.xlane.f32.xlu1 %v210_v30 }
 0x1f0   :  { %228 = vadd.xlane.f32.xlu1 %v227_v9 }
 0x279   :  { %v212_v31 = vpop.xlane.xlu1 %211 }
 0x27a   :  { %v213_v32 = vrot.slane %v212_v31, 4 }
 0x27c   :  { %v214_v33 = vadd.f32 %v213_v32, %v212_v31 }
 0x27d   :  { %v229_v34 = vpop.xlane.xlu1 %228 }
 0x27e   :  { %v215_v35 = vrot.slane %v214_v33, 2  ;;  %v230_v36 = vrot.slane %v229_v34, 4 }
 0x280   :  { %v231_v37 = vadd.f32 %v230_v36, %v229_v34  ;;  %v216_v38 = vadd.f32 %v215_v35, %v214_v33 }
 0x282   :  { %v232_v39 = vrot.slane %v231_v37, 2  ;;  %v217_v40 = vrot.slane %v216_v38, 1 }
 0x284   :  { %v233_v41 = vadd.f32 %v232_v39, %v231_v37  ;;  %v218_v42 = vadd.f32 %v217_v40, %v216_v38 }
 0x286   :  { %282 = vpush %v218_v42  ;;  %v234_v43 = vrot.slane %v233_v41, 1 }
 0x288   :  { %v235_v44 = vadd.f32 %v234_v43, %v233_v41 }
 0x28a   :  { %284 = vpush %v235_v44 }
 0x2b7   :  { %s283_s20 = spop %282 }
 0x2b8   :  { %v220_v45 = vstv %s283_s20 }
 0x2b9   :  { %222 = vst [vmem:[#allocation7] sm:$0xff] %v220_v45 }
 0x2ba   :  { %320 = shalt.err (!%p317_p4)
}
 0x2bb   :  { %s321_s26 = scalar_lea.hbm %s475_s2, 128 }
 0x2bc   :  { %p322_p5 = scmp.ne.s32.totalorder %s475_s2, %s321_s26  ;;  %p325_p6 = scmp.lt.u32.totalorder %s321_s26, %s475_s2 }
 0x2be   :  { %p327_p7 = pnand %p325_p6, %p322_p5 }
 0x2c0   :  { %330 = shalt.err (!%p327_p7)
}
 0x2c1   :  { %249 = dma.vmem_to_hbm [thread:$0]  %s247_s19, 128, %s475_s2, [#allocation8]  }
 0x2c2   :  { %s285_s6 = spop %284  ;;  %s331_s7 = scalar_lea.vmem %s257_s22, 128 }
 0x2c3   :  { %v237_v46 = vstv %s285_s6  ;;  %p332_p8 = scmp.ne.s32.totalorder %s257_s22, %s331_s7  ;;  %p336_p9 = scmp.lt.s32.totalorder %s257_s22, %s257_s22 }
 0x2c4   :  { %239 = vst [vmem:[#allocation9] sm:$0xff] %v237_v46  ;;  %p337_p10 = scmp.lt.s32.totalorder %s331_s7, %s331_s7 }
 0x2c6   :  { %p338_p11 = por %p337_p10, %p336_p9 }
 0x2c8   :  { %p339_p12 = pnand %p338_p11, %p332_p8 }
 0x2ca   :  { %342 = shalt.err (!%p339_p12)
}
 0x2cb   :  { %s343_s10 = scalar_lea.hbm %s476_s3, 128 }
 0x2cc   :  { %p344_p13 = scmp.ne.s32.totalorder %s476_s3, %s343_s10  ;;  %p347_p0 = scmp.lt.u32.totalorder %s343_s10, %s476_s3 }
 0x2ce   :  { %p349_p1 = pnand %p347_p0, %p344_p13 }
 0x2d0   :  { %352 = shalt.err (!%p349_p1)
}
 0x2d1   :  { %259 = dma.vmem_to_hbm [thread:$0]  %s257_s22, 128, %s476_s3, [#allocation10]  }
 0x2d2   :  { %353 = dma.done.wait [#allocation8], 128  }
 0x2d3   :  { %354 = vsyncadd [#allocation8], 4294967168 }
 0x2d4   :  { %355 = dma.done.wait [#allocation10], 128  }
 0x2d5   :  { %356 = vsyncadd [#allocation10], 4294967168 }
 0x2d6   :  { %266 = vsyncpa [#allocation8], 1 }
 0x2d7   :  { %267 = vsyncpa [#allocation10], 1 }

</bundles_post_ra>
